<compile_context>
chip_gen: v5e
topology: v5e:2x2
jax: 0.10.0
libtpu: 0.0.40
codegen_flags: <defaults>
</compile_context>

<pallas_src>
import math

import jax
import jax.numpy as jnp
from jax.experimental import pallas as pl
from jax.experimental.pallas import tpu as pltpu


def _attention_kernel(q_ref, k_ref, v_ref,
                      wq_ref, bq_ref, wk_ref, bk_ref, wv_ref, bv_ref,
                      wo_ref, bo_ref,
                      out_ref):
    # Activations arrive head-major: (H, Bt, S, D).
    H, Bt, S, D = q_ref.shape
    E = out_ref.shape[-1]
    BH = H * Bt
    M = BH * S

    # Flatten (H, Bt, S) into the matmul M dimension (last dim D untouched).
    q2 = q_ref[...].reshape(M, D)
    k2 = k_ref[...].reshape(M, D)
    v2 = v_ref[...].reshape(M, D)

    # Shared per-head projections as single (M, D) x (D, D) matmuls.
    # The 1/sqrt(D) attention scale is already folded into wq/bq.
    qp = (jnp.dot(q2, wq_ref[...], preferred_element_type=jnp.float32)
          + bq_ref[...]).reshape(BH, S, D)
    kp = (jnp.dot(k2, wk_ref[...], preferred_element_type=jnp.float32)
          + bk_ref[...]).reshape(BH, S, D)
    vp = (jnp.dot(v2, wv_ref[...], preferred_element_type=jnp.float32)
          + bv_ref[...]).reshape(BH, S, D)

    # Head-batched scaled-dot-product attention (contraction on last dims;
    # no explicit transposes).
    s = jnp.einsum('bqd,bkd->bqk', qp, kp,
                   preferred_element_type=jnp.float32)          # (BH, S, S)
    s = s - jnp.max(s, axis=-1, keepdims=True)
    p = jnp.exp(s)
    p = p * pl.reciprocal(jnp.sum(p, axis=-1, keepdims=True), approx=True)
    attn = jnp.einsum('bqk,bkd->bqd', p, vp,
                      preferred_element_type=jnp.float32)       # (BH, S, D)

    # Output projection: concat-over-heads + (E, E) matmul expressed as a
    # head-batched (Bt*S, D) x (D, E) matmul followed by a reduce over heads.
    attn_h = attn.reshape(H, Bt * S, D)
    out_h = jnp.einsum('hmd,hde->hme', attn_h, wo_ref[...],
                       preferred_element_type=jnp.float32)      # (H, Bt*S, E)
    out = out_h.sum(axis=0) + bo_ref[...]                       # (Bt*S, E)
    out_ref[...] = out.reshape(Bt, S, E).astype(out_ref.dtype)


def _pick_batch_tile(B, S, E, H, vmem_budget_bytes=8 * 1024 * 1024):
    """Largest divisor of B whose per-step working set fits the VMEM budget,
    capped so B >= 2 still yields >= 2 grid steps (keeps both v7x TCs busy)."""
    per_batch = 4 * (2 * 4 * S * E          # q/k/v/out tiles (double-buffered)
                     + 3 * S * E            # projected Q/K/V
                     + 2 * H * S * S        # scores + probabilities
                     + (H + 1) * S * E)     # attention out + per-head partials
    max_bt = max(1, vmem_budget_bytes // max(per_batch, 1))
    if B >= 2:
        max_bt = min(max_bt, (B + 1) // 2)
    bt = 1
    for cand in range(1, min(B, max_bt) + 1):
        if B % cand == 0:
            bt = cand
    return bt


def attention_layer(mQ, mK, mV, params, *, nhead):
    """Pallas implementation of AttentionLayer.forward.

    mQ, mK, mV: (B, S, E) float32.
    params: PyTorch nn.Linear convention (W is (out, in), y = x @ W.T + b):
        Wq, bq, Wk, bk, Wv, bv   per-head, shapes (D, D) / (D,)
        Wo, bo                   output projection, shapes (E, E) / (E,)
    """
    B, S, E = mK.shape
    H = nhead
    D = E // H
    scale = 1.0 / math.sqrt(D)
    f32 = jnp.float32

    # Per-head projection weights in (in, out) layout; scale folded into Q.
    wq = params["Wq"].astype(f32).T * scale                 # (D, D)
    bq = (params["bq"].astype(f32) * scale).reshape(1, D)
    wk = params["Wk"].astype(f32).T                         # (D, D)
    bk = params["bk"].astype(f32).reshape(1, D)
    wv = params["Wv"].astype(f32).T                         # (D, D)
    bv = params["bv"].astype(f32).reshape(1, D)
    # Output projection reshaped head-major: Wo.T (E_in, E_out) -> (H, D, E).
    wo = params["Wo"].astype(f32).T.reshape(H, D, E)
    bo = params["bo"].astype(f32).reshape(1, E)

    # Head-major relayout of the activations in the wrapper (free XLA
    # reshape/transpose) so the kernel never slices inside the lane dim.
    def to_head_major(x):
        return x.reshape(B, S, H, D).transpose(2, 0, 1, 3)  # (H, B, S, D)

    qh, kh, vh = to_head_major(mQ), to_head_major(mK), to_head_major(mV)

    Bt = _pick_batch_tile(B, S, E, H)
    grid = (B // Bt,)

    act_spec = pl.BlockSpec((H, Bt, S, D), lambda b: (0, b, 0, 0))
    w_dd = pl.BlockSpec((D, D), lambda b: (0, 0))
    b_dd = pl.BlockSpec((1, D), lambda b: (0, 0))
    w_out = pl.BlockSpec((H, D, E), lambda b: (0, 0, 0))
    b_out = pl.BlockSpec((1, E), lambda b: (0, 0))

    flops = (6 * B * S * H * D * D          # Q/K/V projections
             + 4 * B * H * S * S * D        # QK^T and PV
             + 2 * B * S * E * E)           # output projection
    transcendentals = B * H * S * (S + 1)   # exp + reciprocal
    bytes_accessed = 4 * (4 * B * S * E + 3 * (D * D + D) + H * D * E + E)

    return pl.pallas_call(
        _attention_kernel,
        out_shape=jax.ShapeDtypeStruct((B, S, E), mQ.dtype),
        grid_spec=pltpu.PrefetchScalarGridSpec(
            num_scalar_prefetch=0,
            grid=grid,
            in_specs=[act_spec, act_spec, act_spec,
                      w_dd, b_dd,          # Wq, bq
                      w_dd, b_dd,          # Wk, bk
                      w_dd, b_dd,          # Wv, bv
                      w_out, b_out],       # Wo, bo
            out_specs=pl.BlockSpec((Bt, S, E), lambda b: (b, 0, 0)),
        ),
        compiler_params=pltpu.CompilerParams(
            dimension_semantics=("parallel",),
            vmem_limit_bytes=32 * 1024 * 1024),
        cost_estimate=pl.CostEstimate(flops=flops,
                                      transcendentals=transcendentals,
                                      bytes_accessed=bytes_accessed),
    )(qh, kh, vh, wq, bq, wk, bk, wv, bv, wo, bo)


def _reference(mQ, mK, mV, params, *, nhead):
    """Pure-JAX reference mirroring the PyTorch forward exactly."""
    B, S, E = mK.shape
    D = E // nhead

    def lin(x, W, b):
        return x @ W.T + b

    key = mK.reshape(B, S, nhead, D)
    qry = mQ.reshape(B, S, nhead, D)
    val = mV.reshape(B, S, nhead, D)

    K_ = lin(key, params["Wk"], params["bk"]).transpose(0, 2, 1, 3)   # (B,H,S,D)
    Q_ = lin(qry, params["Wq"], params["bq"]).transpose(0, 2, 1, 3)
    V_ = lin(val, params["Wv"], params["bv"]).transpose(0, 2, 1, 3)

    prod = jnp.einsum("bhqd,bhkd->bhqk", Q_, K_) / math.sqrt(D)
    scores = jax.nn.softmax(prod, axis=-1)
    out = jnp.einsum("bhqk,bhkd->bhqd", scores, V_)
    conc = out.transpose(0, 2, 1, 3).reshape(B, S, E)
    return lin(conc, params["Wo"], params["bo"])


if __name__ == "__main__":
    B, S, E, H = 2, 8, 32, 4
    D = E // H

    key = jax.random.PRNGKey(0)
    keys = jax.random.split(key, 11)

    # Deterministic parameter init (PyTorch nn.Linear convention: W (out, in)).
    params = {
        "Wq": jax.random.normal(keys[0], (D, D), jnp.float32) * 0.1,
        "bq": jax.random.normal(keys[1], (D,), jnp.float32) * 0.1,
        "Wk": jax.random.normal(keys[2], (D, D), jnp.float32) * 0.1,
        "bk": jax.random.normal(keys[3], (D,), jnp.float32) * 0.1,
        "Wv": jax.random.normal(keys[4], (D, D), jnp.float32) * 0.1,
        "bv": jax.random.normal(keys[5], (D,), jnp.float32) * 0.1,
        "Wo": jax.random.normal(keys[6], (E, E), jnp.float32) * 0.1,
        "bo": jax.random.normal(keys[7], (E,), jnp.float32) * 0.1,
    }

    mQ = jax.random.normal(keys[8], (B, S, E), jnp.float32)
    mK = jax.random.normal(keys[9], (B, S, E), jnp.float32)
    mV = jax.random.normal(keys[10], (B, S, E), jnp.float32)

    out = attention_layer(mQ, mK, mV, params, nhead=H)
    out = jax.block_until_ready(out)

    ref = _reference(mQ, mK, mV, params, nhead=H)
    assert out.shape == (B, S, E)
    # f32 matmuls + approx (EUP) reciprocal: tolerance slightly relaxed vs 1e-4.
    assert jnp.allclose(out, ref, atol=1e-3, rtol=1e-3), "mismatch vs reference"

    print("KERNEL_OK")
</pallas_src>

<mosaic_0001>
module attributes {stable_mosaic.version = 11 : i64} {
  func.func @_attention_kernel(%arg0: i32, %arg1: memref<4x1x8x8xf32, #tpu.memory_space<vmem>>, %arg2: memref<4x1x8x8xf32, #tpu.memory_space<vmem>>, %arg3: memref<4x1x8x8xf32, #tpu.memory_space<vmem>>, %arg4: memref<8x8xf32, #tpu.memory_space<vmem>>, %arg5: memref<1x8xf32, #tpu.memory_space<vmem>>, %arg6: memref<8x8xf32, #tpu.memory_space<vmem>>, %arg7: memref<1x8xf32, #tpu.memory_space<vmem>>, %arg8: memref<8x8xf32, #tpu.memory_space<vmem>>, %arg9: memref<1x8xf32, #tpu.memory_space<vmem>>, %arg10: memref<4x8x32xf32, #tpu.memory_space<vmem>>, %arg11: memref<1x32xf32, #tpu.memory_space<vmem>>, %arg12: memref<1x8x32xf32, #tpu.memory_space<vmem>>) attributes {dimension_semantics = [#tpu.dimension_semantics<parallel>], iteration_bounds = array<i64: 2>, scalar_prefetch = 0 : i64, scratch_operands = 0 : i64, tpu.core_type = #tpu.core_type<tc>, window_params = [{transform_indices = @transform_0, window_bounds = array<i64: 4, 1, 8, 8>}, {transform_indices = @transform_1, window_bounds = array<i64: 4, 1, 8, 8>}, {transform_indices = @transform_2, window_bounds = array<i64: 4, 1, 8, 8>}, {pipeline_mode = #tpu.pipeline_mode<synchronous>, transform_indices = @transform_3, window_bounds = array<i64: 8, 8>}, {pipeline_mode = #tpu.pipeline_mode<synchronous>, transform_indices = @transform_4, window_bounds = array<i64: 1, 8>}, {pipeline_mode = #tpu.pipeline_mode<synchronous>, transform_indices = @transform_5, window_bounds = array<i64: 8, 8>}, {pipeline_mode = #tpu.pipeline_mode<synchronous>, transform_indices = @transform_6, window_bounds = array<i64: 1, 8>}, {pipeline_mode = #tpu.pipeline_mode<synchronous>, transform_indices = @transform_7, window_bounds = array<i64: 8, 8>}, {pipeline_mode = #tpu.pipeline_mode<synchronous>, transform_indices = @transform_8, window_bounds = array<i64: 1, 8>}, {pipeline_mode = #tpu.pipeline_mode<synchronous>, transform_indices = @transform_9, window_bounds = array<i64: 4, 8, 32>}, {pipeline_mode = #tpu.pipeline_mode<synchronous>, transform_indices = @transform_10, window_bounds = array<i64: 1, 32>}, {transform_indices = @transform_11, window_bounds = array<i64: 1, 8, 32>}]} {
    %c0 = arith.constant 0 : index
    %c0_0 = arith.constant 0 : index
    %c0_1 = arith.constant 0 : index
    %c0_2 = arith.constant 0 : index
    %0 = vector.load %arg1[%c0, %c0_0, %c0_1, %c0_2] : memref<4x1x8x8xf32, #tpu.memory_space<vmem>>, vector<4x1x8x8xf32>
    %1 = vector.shape_cast %0 : vector<4x1x8x8xf32> to vector<32x8xf32>
    %c0_3 = arith.constant 0 : index
    %c0_4 = arith.constant 0 : index
    %c0_5 = arith.constant 0 : index
    %c0_6 = arith.constant 0 : index
    %2 = vector.load %arg2[%c0_3, %c0_4, %c0_5, %c0_6] : memref<4x1x8x8xf32, #tpu.memory_space<vmem>>, vector<4x1x8x8xf32>
    %3 = vector.shape_cast %2 : vector<4x1x8x8xf32> to vector<32x8xf32>
    %c0_7 = arith.constant 0 : index
    %c0_8 = arith.constant 0 : index
    %c0_9 = arith.constant 0 : index
    %c0_10 = arith.constant 0 : index
    %4 = vector.load %arg3[%c0_7, %c0_8, %c0_9, %c0_10] : memref<4x1x8x8xf32, #tpu.memory_space<vmem>>, vector<4x1x8x8xf32>
    %5 = vector.shape_cast %4 : vector<4x1x8x8xf32> to vector<32x8xf32>
    %c0_11 = arith.constant 0 : index
    %c0_12 = arith.constant 0 : index
    %6 = vector.load %arg4[%c0_11, %c0_12] : memref<8x8xf32, #tpu.memory_space<vmem>>, vector<8x8xf32>
    %cst = arith.constant dense<0.000000e+00> : vector<32x8xf32>
    %7 = tpu.matmul %1, %6, %cst {dimension_numbers = #tpu.dot_dimension_numbers<[1], [0], [0], [1], [0, 0, 1, 1], [], []>} : vector<32x8xf32>, vector<8x8xf32>, vector<32x8xf32> -> vector<32x8xf32>
    %c0_13 = arith.constant 0 : index
    %c0_14 = arith.constant 0 : index
    %8 = vector.load %arg5[%c0_13, %c0_14] : memref<1x8xf32, #tpu.memory_space<vmem>>, vector<1x8xf32>
    %9 = vector.broadcast %8 : vector<1x8xf32> to vector<32x8xf32>
    %10 = arith.addf %7, %9 : vector<32x8xf32>
    %11 = vector.shape_cast %10 : vector<32x8xf32> to vector<4x8x8xf32>
    %c0_15 = arith.constant 0 : index
    %c0_16 = arith.constant 0 : index
    %12 = vector.load %arg6[%c0_15, %c0_16] : memref<8x8xf32, #tpu.memory_space<vmem>>, vector<8x8xf32>
    %cst_17 = arith.constant dense<0.000000e+00> : vector<32x8xf32>
    %13 = tpu.matmul %3, %12, %cst_17 {dimension_numbers = #tpu.dot_dimension_numbers<[1], [0], [0], [1], [0, 0, 1, 1], [], []>} : vector<32x8xf32>, vector<8x8xf32>, vector<32x8xf32> -> vector<32x8xf32>
    %c0_18 = arith.constant 0 : index
    %c0_19 = arith.constant 0 : index
    %14 = vector.load %arg7[%c0_18, %c0_19] : memref<1x8xf32, #tpu.memory_space<vmem>>, vector<1x8xf32>
    %15 = vector.broadcast %14 : vector<1x8xf32> to vector<32x8xf32>
    %16 = arith.addf %13, %15 : vector<32x8xf32>
    %17 = vector.shape_cast %16 : vector<32x8xf32> to vector<4x8x8xf32>
    %c0_20 = arith.constant 0 : index
    %c0_21 = arith.constant 0 : index
    %18 = vector.load %arg8[%c0_20, %c0_21] : memref<8x8xf32, #tpu.memory_space<vmem>>, vector<8x8xf32>
    %cst_22 = arith.constant dense<0.000000e+00> : vector<32x8xf32>
    %19 = tpu.matmul %5, %18, %cst_22 {dimension_numbers = #tpu.dot_dimension_numbers<[1], [0], [0], [1], [0, 0, 1, 1], [], []>} : vector<32x8xf32>, vector<8x8xf32>, vector<32x8xf32> -> vector<32x8xf32>
    %c0_23 = arith.constant 0 : index
    %c0_24 = arith.constant 0 : index
    %20 = vector.load %arg9[%c0_23, %c0_24] : memref<1x8xf32, #tpu.memory_space<vmem>>, vector<1x8xf32>
    %21 = vector.broadcast %20 : vector<1x8xf32> to vector<32x8xf32>
    %22 = arith.addf %19, %21 : vector<32x8xf32>
    %23 = vector.shape_cast %22 : vector<32x8xf32> to vector<4x8x8xf32>
    "tpu.trace_start"() <{level = 10 : i32, message = "bqd,bkd->bqk"}> : () -> ()
    %cst_25 = arith.constant dense<0.000000e+00> : vector<4x8x8xf32>
    %24 = tpu.matmul %11, %17, %cst_25 {dimension_numbers = #tpu.dot_dimension_numbers<[2], [2], [1], [1], [0, 0, 0, 1, 1, 1], [0], [0]>} : vector<4x8x8xf32>, vector<4x8x8xf32>, vector<4x8x8xf32> -> vector<4x8x8xf32>
    "tpu.trace_stop"() : () -> ()
    %cst_26 = arith.constant dense<0xFF800000> : vector<4x8xf32>
    %25 = vector.multi_reduction <maximumf>, %24, %cst_26 [2] : vector<4x8x8xf32> to vector<4x8xf32>
    %26 = vector.shape_cast %25 : vector<4x8xf32> to vector<4x8x1xf32>
    %27 = vector.broadcast %26 : vector<4x8x1xf32> to vector<4x8x8xf32>
    %28 = arith.subf %24, %27 : vector<4x8x8xf32>
    %29 = math.exp %28 : vector<4x8x8xf32>
    %cst_27 = arith.constant dense<0.000000e+00> : vector<4x8xf32>
    %30 = vector.multi_reduction <add>, %29, %cst_27 [2] : vector<4x8x8xf32> to vector<4x8xf32>
    %31 = vector.shape_cast %30 : vector<4x8xf32> to vector<4x8x1xf32>
    %32 = tpu.reciprocal %31 {approx = true} : vector<4x8x1xf32> -> vector<4x8x1xf32>
    %33 = vector.broadcast %32 : vector<4x8x1xf32> to vector<4x8x8xf32>
    %34 = arith.mulf %29, %33 : vector<4x8x8xf32>
    "tpu.trace_start"() <{level = 10 : i32, message = "bqk,bkd->bqd"}> : () -> ()
    %cst_28 = arith.constant dense<0.000000e+00> : vector<4x8x8xf32>
    %35 = tpu.matmul %34, %23, %cst_28 {dimension_numbers = #tpu.dot_dimension_numbers<[2], [1], [1], [2], [0, 0, 0, 1, 1, 2], [0], [0]>} : vector<4x8x8xf32>, vector<4x8x8xf32>, vector<4x8x8xf32> -> vector<4x8x8xf32>
    "tpu.trace_stop"() : () -> ()
    %c0_29 = arith.constant 0 : index
    %c0_30 = arith.constant 0 : index
    %c0_31 = arith.constant 0 : index
    %36 = vector.load %arg10[%c0_29, %c0_30, %c0_31] : memref<4x8x32xf32, #tpu.memory_space<vmem>>, vector<4x8x32xf32>
    "tpu.trace_start"() <{level = 10 : i32, message = "hmd,hde->hme"}> : () -> ()
    %cst_32 = arith.constant dense<0.000000e+00> : vector<4x8x32xf32>
    %37 = tpu.matmul %35, %36, %cst_32 {dimension_numbers = #tpu.dot_dimension_numbers<[2], [1], [1], [2], [0, 0, 0, 1, 1, 2], [0], [0]>} : vector<4x8x8xf32>, vector<4x8x32xf32>, vector<4x8x32xf32> -> vector<4x8x32xf32>
    "tpu.trace_stop"() : () -> ()
    %cst_33 = arith.constant dense<0.000000e+00> : vector<8x32xf32>
    %38 = vector.multi_reduction <add>, %37, %cst_33 [0] : vector<4x8x32xf32> to vector<8x32xf32>
    %c0_34 = arith.constant 0 : index
    %c0_35 = arith.constant 0 : index
    %39 = vector.load %arg11[%c0_34, %c0_35] : memref<1x32xf32, #tpu.memory_space<vmem>>, vector<1x32xf32>
    %40 = vector.broadcast %39 : vector<1x32xf32> to vector<8x32xf32>
    %41 = arith.addf %38, %40 : vector<8x32xf32>
    %42 = vector.shape_cast %41 : vector<8x32xf32> to vector<1x8x32xf32>
    %c0_36 = arith.constant 0 : index
    %c0_37 = arith.constant 0 : index
    %c0_38 = arith.constant 0 : index
    %43 = vector.load %arg12[%c0_36, %c0_37, %c0_38] : memref<1x8x32xf32, #tpu.memory_space<vmem>>, vector<1x8x32xf32>
    tpu.vector_store %arg12[%c0_36, %c0_37, %c0_38], %42 {strides = array<i32>} : memref<1x8x32xf32, #tpu.memory_space<vmem>>, vector<1x8x32xf32>,
    return
  }
  func.func @transform_0(%arg0: i32) -> (i32, i32, i32, i32) {
    %c0_i32 = arith.constant 0 : i32
    %c0_i32_0 = arith.constant 0 : i32
    %c0_i32_1 = arith.constant 0 : i32
    %c0_i32_2 = arith.constant 0 : i32
    return %c0_i32, %arg0, %c0_i32_0, %c0_i32_1 : i32, i32, i32, i32
  }
  func.func @transform_1(%arg0: i32) -> (i32, i32, i32, i32) {
    %c0_i32 = arith.constant 0 : i32
    %c0_i32_0 = arith.constant 0 : i32
    %c0_i32_1 = arith.constant 0 : i32
    %c0_i32_2 = arith.constant 0 : i32
    return %c0_i32, %arg0, %c0_i32_0, %c0_i32_1 : i32, i32, i32, i32
  }
  func.func @transform_2(%arg0: i32) -> (i32, i32, i32, i32) {
    %c0_i32 = arith.constant 0 : i32
    %c0_i32_0 = arith.constant 0 : i32
    %c0_i32_1 = arith.constant 0 : i32
    %c0_i32_2 = arith.constant 0 : i32
    return %c0_i32, %arg0, %c0_i32_0, %c0_i32_1 : i32, i32, i32, i32
  }
  func.func @transform_3(%arg0: i32) -> (i32, i32) {
    %c0_i32 = arith.constant 0 : i32
    %c0_i32_0 = arith.constant 0 : i32
    %c0_i32_1 = arith.constant 0 : i32
    return %c0_i32, %c0_i32_0 : i32, i32
  }
  func.func @transform_4(%arg0: i32) -> (i32, i32) {
    %c0_i32 = arith.constant 0 : i32
    %c0_i32_0 = arith.constant 0 : i32
    %c0_i32_1 = arith.constant 0 : i32
    return %c0_i32, %c0_i32_0 : i32, i32
  }
  func.func @transform_5(%arg0: i32) -> (i32, i32) {
    %c0_i32 = arith.constant 0 : i32
    %c0_i32_0 = arith.constant 0 : i32
    %c0_i32_1 = arith.constant 0 : i32
    return %c0_i32, %c0_i32_0 : i32, i32
  }
  func.func @transform_6(%arg0: i32) -> (i32, i32) {
    %c0_i32 = arith.constant 0 : i32
    %c0_i32_0 = arith.constant 0 : i32
    %c0_i32_1 = arith.constant 0 : i32
    return %c0_i32, %c0_i32_0 : i32, i32
  }
  func.func @transform_7(%arg0: i32) -> (i32, i32) {
    %c0_i32 = arith.constant 0 : i32
    %c0_i32_0 = arith.constant 0 : i32
    %c0_i32_1 = arith.constant 0 : i32
    return %c0_i32, %c0_i32_0 : i32, i32
  }
  func.func @transform_8(%arg0: i32) -> (i32, i32) {
    %c0_i32 = arith.constant 0 : i32
    %c0_i32_0 = arith.constant 0 : i32
    %c0_i32_1 = arith.constant 0 : i32
    return %c0_i32, %c0_i32_0 : i32, i32
  }
  func.func @transform_9(%arg0: i32) -> (i32, i32, i32) {
    %c0_i32 = arith.constant 0 : i32
    %c0_i32_0 = arith.constant 0 : i32
    %c0_i32_1 = arith.constant 0 : i32
    %c0_i32_2 = arith.constant 0 : i32
    return %c0_i32, %c0_i32_0, %c0_i32_1 : i32, i32, i32
  }
  func.func @transform_10(%arg0: i32) -> (i32, i32) {
    %c0_i32 = arith.constant 0 : i32
    %c0_i32_0 = arith.constant 0 : i32
    %c0_i32_1 = arith.constant 0 : i32
    return %c0_i32, %c0_i32_0 : i32, i32
  }
  func.func @transform_11(%arg0: i32) -> (i32, i32, i32) {
    %c0_i32 = arith.constant 0 : i32
    %c0_i32_0 = arith.constant 0 : i32
    %c0_i32_1 = arith.constant 0 : i32
    return %arg0, %c0_i32, %c0_i32_0 : i32, i32, i32
  }
}

</mosaic_0001>

<bundles_post_ra>
// kernel: tpu_custom_call.1
= control target key start
LH: loop header
LB: loop body
LE: loop exit
PB: predicated region body
PF: predicated region fallthrough
CT: control target
= control target key end

     0   :  { %s2040_s0 = inlined_call_operand.hbm [shape: f32[4,2,8,8], index: 0, kind: input, shape index: {}]   ;;  %s2041_s1 = inlined_call_operand.hbm [shape: f32[4,2,8,8], index: 1, kind: input, shape index: {}]   ;;  %s2042_s2 = inlined_call_operand.hbm [shape: f32[4,2,8,8], index: 2, kind: input, shape index: {}]   ;;  %s2043_s3 = inlined_call_operand.hbm [shape: f32[8,8], index: 3, kind: input, shape index: {}]   ;;  %s2044_s4 = inlined_call_operand.vmem [shape: f32[1,8], index: 4, kind: input, shape index: {}]   ;;  %s2045_s5 = inlined_call_operand.hbm [shape: f32[8,8], index: 5, kind: input, shape index: {}]   ;;  %s2046_s6 = inlined_call_operand.vmem [shape: f32[1,8], index: 6, kind: input, shape index: {}]   ;;  %s2047_s7 = inlined_call_operand.hbm [shape: f32[8,8], index: 7, kind: input, shape index: {}]   ;;  %s2048_s8 = inlined_call_operand.vmem [shape: f32[1,8], index: 8, kind: input, shape index: {}]   ;;  %s2049_s9 = inlined_call_operand.hbm [shape: f32[4,8,32], index: 9, kind: input, shape index: {}]   ;;  %s2050_s10 = inlined_call_operand.vmem [shape: f32[1,32], index: 10, kind: input, shape index: {}]   ;;  %s2051_s11 = inlined_call_operand.hbm [shape: f32[2,8,32], index: 11, kind: output, shape index: {}]  }
   0x1   :  { %2062 = sst [smem:[#allocation26_spill]] %s2041_s1 }
   0x2   :  { %2063 = sst [smem:[#allocation27_spill]] %s2043_s3 }
   0x3   :  { %2064 = sst [smem:[#allocation28_spill]] %s2045_s5 }
   0x4   :  { %2065 = sst [smem:[#allocation29_spill]] %s2047_s7 }
   0x5   :  { %2066 = sst [smem:[#allocation30_spill]] %s2050_s10 }
   0x6   :  { %2067 = sst [smem:[#allocation31_spill]] %s2051_s11 }
   0x7   :  { %16 = vsyncpa [#allocation3], 0 }
   0x8   :  { %18 = vsyncpa [#allocation3 + $0x1], 0 }
   0x9   :  { %19 = vsyncpa [#allocation6], 0 }
   0xa   :  { %21 = vsyncpa [#allocation6 + $0x1], 0 }
   0xb   :  { %22 = vsyncpa [#allocation9], 0 }
   0xc   :  { %23 = vsyncpa [#allocation12], 0 }
   0xd   :  { %24 = vsyncpa [#allocation4], 0 }
   0xe   :  { %26 = vsyncpa [#allocation4 + $0x1], 0  ;;  %s1744_s17 = smov 0   ;;  %s1746_s18 = smov 0  }
   0xf   :  { %s1748_s19 = smov 0   ;;  %s1750_s20 = smov 0  }
  0x10 LB: > { %2068 = sst [smem:[#allocation20_spill]] %s1663_s17  ;;  %s1765_s21 = sadd.s32 4294967295, %s1675_s20   ;;  %s1675_s20 = sphi %s1750_s20, %s2096_s20   ;;  %s1671_s19 = sphi %s1748_s19, %s2100_s19   ;;  %s1667_s18 = sphi %s1746_s18, %s2099_s18   ;;  %s1663_s17 = sphi %s1744_s17, %s2098_s17  }
  0x11   : > { %2069 = sst [smem:[#allocation21_spill]] %s1675_s20  ;;  %s1213_s22 = sadd.s32 4294967294, %s1675_s20  }
  0x12   : > { %p52_p0 = scmp.ne.s32.totalorder %s1667_s18, %s1663_s17  ;;  %p2061_p1 = scmp.eq.s32.totalorder %s1765_s21, 0 }
  0x13   : > { %p296_p2 = scmp.eq.s32.totalorder %s1765_s21, 1  ;;  %p302_p3 = scmp.eq.s32.totalorder %s1213_s22, 1 }
  0x14   : > { %p1774_p4 = por %p2061_p1, %p52_p0  ;;  %p1214_p5 = scmp.ge.s32.totalorder %s1675_s20, 1 }
  0x15   : > { %p1779_p6 = por %p302_p3, %p52_p0  ;;  %p309_p7 = scmp.lt.s32.totalorder %s1675_s20, 3 }
  0x16   : > { %s2073_s3 = sld [smem:[#allocation27_spill]]  ;;  %s1677_s29 = smov [#allocation8]  }
  0x17   : > { %s2071_s24 = scalar_select %p1779_p6, 1, 0 }
  0x18   : > { %p1787_p8 = pnand %p1214_p5, %p309_p7  ;;  %s323_s30 = sshll.u32 %s1677_s29, 4  ;;  %s324_s30 = int_to_ptr.vmem [resolvable:$true] %s323_s30 }
  0x19   : > { %2072 = sst [smem:[#allocation22_spill]] %s2071_s24  ;;  %s1678_s16 = smov [#allocation11]  }
  0x1a   : > { %p1291_p10 = pneg %p1787_p8  ;;  %s2075_s7 = sld [smem:[#allocation29_spill]] }
  0x1b   : > { %s353_s22 = sshll.u32 %s1678_s16, 4  ;;  %s1808_s25 = sadd.s32 1, %s1675_s20   ;;  %s354_s22 = int_to_ptr.vmem [resolvable:$true] %s353_s22 }
  0x1c   : > { %s321_s27 = sshll.u32 %s2073_s3, 4  ;;  %p1799_p11 = pnand %p1291_p10, %p2061_p1  ;;  %s322_s27 = int_to_ptr.hbm [resolvable:$true] %s321_s27 }
  0x1d   : > { %2077 = sst [smem:[#allocation23_spill]] %s1808_s25  ;;  %s39_s26 = sadd.s32 1, %s1671_s19 }
  0x1e   : > { %1294 = dma.hbm_to_vmem [thread:$0]  (!%p1799_p11), %s322_s27, 128, %s324_s30, [#allocation9]  }
  0x1f   : > { %s36_s29 = ssub.s32 %s1675_s20, %s1808_s25  ;;  %p46_p12 = scmp.ne.s32.totalorder %s1671_s19, %s1667_s18 }
  0x20   : > { %s351_s14 = sshll.u32 %s2075_s7, 4  ;;  %p37_p13 = scmp.eq.s32.totalorder %s36_s29, 0  ;;  %s352_s14 = int_to_ptr.hbm [resolvable:$true] %s351_s14 }
  0x21   : > { %1300 = dma.hbm_to_vmem [thread:$0]  (!%p1799_p11), %s352_s14, 128, %s354_s22, [#allocation12]  }
  0x22   : > { %p47_p0 = scmp.eq.s32.totalorder %s1675_s20, 0  ;;  %p1818_p3 = por %p296_p2, %p46_p12 }
  0x23   : > { %s1823_s13 = scalar_select %p37_p13, %s1671_s19, %s39_s26  }
  0x24   : > { %s2078_s12 = scalar_select %p1818_p3, 1, 0 }
  0x25   : > { %2080 = sst [smem:[#allocation25_spill]] %s1823_s13  ;;  %p48_p5 = por %p47_p0, %p46_p12 }
  0x26   : > { %2079 = sst [smem:[#allocation24_spill]] %s2078_s12  ;;  %p1322_p7 = scmp.lt.s32.totalorder %s1675_s20, 2 }
  0x27   : > { %s2054_s27 = sand.u32 1, %s1671_s19   ;;  %s1832_s14 = sshll.u32 %s1675_s20, 3 }
  0x28   : > { %s1829_s30 = sshll.u32 %s2054_s27, 5  ;;  %p1834_p10 = pnand %p1322_p7, %p48_p5 }
  0x29   : > { %s405_s22 = sand.u32 1, %s1675_s20   ;;  %s2082_s1 = sld [smem:[#allocation26_spill]] }
  0x2a   : > { %s409_s7 = scalar_lea.vmem [#allocation5], %s1829_s30  ;;  %s2083_s5 = sld [smem:[#allocation28_spill]] }
  0x2b   : > { %s416_s13 = sshll.u32 %s409_s7, 4  ;;  %s1847_s12 = scalar_lea.sflag [#allocation6], %s405_s22  ;;  %s417_s13 = int_to_ptr.vmem [resolvable:$true] %s416_s13 }
  0x2c   : > { %p1451_p12 = pneg %p1834_p10 }
  0x2f   : > { %s413_s3 = scalar_lea.hbm %s2082_s1, %s1832_s14  ;;  %s1454_s29 = scalar_lea.hbm %s2082_s1, 64 }
  0x30   : > { %s414_s25 = sshll.u32 %s413_s3, 4  ;;  %s336_s17 = sshll.u32 %s2083_s5, 4  ;;  %s415_s25 = int_to_ptr.hbm [resolvable:$true] %s414_s25  ;;  %s337_s17 = int_to_ptr.hbm [resolvable:$true] %s336_s17 }
  0x31   : > { %s1447_s10 = sshra.s32 %s415_s25, 4  ;;  %s1448_s10 = int_to_ptr.hbm [resolvable:$true] %s1447_s10 }
  0x32   : > { %s1449_s11 = scalar_lea.hbm %s1448_s10, 32  ;;  %p1455_p5 = scmp.lt.s32.totalorder %s1448_s10, %s2082_s1 }
  0x33   : > { %p1450_p2 = scmp.ne.s32.totalorder %s1448_s10, %s1449_s11  ;;  %p1456_p7 = scmp.lt.s32.totalorder %s1454_s29, %s1449_s11 }
  0x35   : > { %p1452_p13 = pnand %p1451_p12, %p1450_p2  ;;  %p1457_p9 = por %p1456_p7, %p1455_p5 }
  0x37   : > { %p1453_p0 = pneg %p1452_p13 }
  0x39   : > { %p1458_p1 = pnand %p1457_p9, %p1453_p0 }
  0x3b   : > { %1461 = shalt.err (!%p1458_p1)
}
  0x3c   : > { %s1679_s24 = smov 256   ;;  %s1680_s27 = smov 128  }
  0x3d   : > { %s1681_s22 = smov 8   ;;  %s1682_s10 = smov [#allocation10]  }
  0x3e   : > { %1310 = dma.hbm_to_vmem [thread:$0]  (!%p1834_p10), %s415_s25, 512, %s417_s13, %s1847_s12, %s1679_s24, %s1680_s27, %s1681_s22  }
  0x3f   : > { %s338_s11 = sshll.u32 %s1682_s10, 4  ;;  %s365_s3 = sshll.u32 %s2049_s9, 4  ;;  %s339_s11 = int_to_ptr.vmem [resolvable:$true] %s338_s11  ;;  %s366_s3 = int_to_ptr.hbm [resolvable:$true] %s365_s3 }
  0x40   : > { %1297 = dma.hbm_to_vmem [thread:$0]  (!%p1799_p11), %s337_s17, 128, %s339_s11, [#allocation9]  }
  0x41   : > { %s1683_s29 = smov [#allocation13]   ;;  %s392_s25 = scalar_lea.hbm %s2040_s0, %s1832_s14 }
  0x42   : > { %s367_s26 = sshll.u32 %s1683_s29, 4  ;;  %s393_s13 = sshll.u32 %s392_s25, 4  ;;  %s368_s26 = int_to_ptr.vmem [resolvable:$true] %s367_s26  ;;  %s394_s13 = int_to_ptr.hbm [resolvable:$true] %s393_s13 }
  0x43   : > { %1303 = dma.hbm_to_vmem [thread:$0]  (!%p1799_p11), %s366_s3, 512, %s368_s26, [#allocation12], %s1680_s27, %s1680_s27, %s1681_s22  }
  0x44   : > { %s388_s10 = scalar_lea.vmem [#allocation2], %s1829_s30  ;;  %s2084_s7 = sand.u32 1, %s1671_s19  }
  0x45   : > { %s395_s20 = sshll.u32 %s388_s10, 4  ;;  %s385_s17 = scalar_lea.sflag [#allocation3], %s2084_s7  ;;  %s396_s20 = int_to_ptr.vmem [resolvable:$true] %s395_s20 }
  0x46   : > { %s1537_s11 = sshra.s32 %s394_s13, 4  ;;  %s1544_s15 = scalar_lea.hbm %s2040_s0, 64  ;;  %s1538_s11 = int_to_ptr.hbm [resolvable:$true] %s1537_s11 }
  0x47   : > { %s1539_s29 = scalar_lea.hbm %s1538_s11, 32  ;;  %p1545_p11 = scmp.lt.s32.totalorder %s1538_s11, %s2040_s0 }
  0x48   : > { %p1540_p1 = scmp.ne.s32.totalorder %s1538_s11, %s1539_s29  ;;  %p1546_p13 = scmp.lt.s32.totalorder %s1544_s15, %s1539_s29 }
  0x4a   : > { %p1542_p9 = pnand %p1540_p1, %p1451_p12  ;;  %p1547_p0 = por %p1546_p13, %p1545_p11 }
  0x4c   : > { %p1543_p2 = pneg %p1542_p9 }
  0x4e   : > { %p1548_p5 = pnand %p1547_p0, %p1543_p2 }
  0x50   : > { %1551 = shalt.err (!%p1548_p5)
}
  0x51   : > { %1307 = dma.hbm_to_vmem [thread:$0]  (!%p1834_p10), %s394_s13, 512, %s396_s20, %s385_s17, %s1679_s24, %s1680_s27, %s1681_s22  }
  0x52   : > { %s434_s7 = scalar_lea.hbm %s2042_s2, %s1832_s14  ;;  %s430_s5 = scalar_lea.vmem [#allocation7], %s1829_s30 }
  0x53   : > { %s435_s1 = sshll.u32 %s434_s7, 4  ;;  %s437_s11 = sshll.u32 %s430_s5, 4  ;;  %s436_s1 = int_to_ptr.hbm [resolvable:$true] %s435_s1  ;;  %s438_s11 = int_to_ptr.vmem [resolvable:$true] %s437_s11 }
  0x54   : > { %s1567_s29 = sshra.s32 %s436_s1, 4  ;;  %s1574_s13 = scalar_lea.hbm %s2042_s2, 64  ;;  %s1568_s29 = int_to_ptr.hbm [resolvable:$true] %s1567_s29 }
  0x55   : > { %s1569_s15 = scalar_lea.hbm %s1568_s29, 32  ;;  %p1575_p2 = scmp.lt.s32.totalorder %s1568_s29, %s2042_s2 }
  0x56   : > { %p1570_p7 = scmp.ne.s32.totalorder %s1568_s29, %s1569_s15  ;;  %p1576_p11 = scmp.lt.s32.totalorder %s1574_s13, %s1569_s15 }
  0x58   : > { %p1572_p1 = pnand %p1570_p7, %p1451_p12  ;;  %p1577_p13 = por %p1576_p11, %p1575_p2 }
  0x5a   : > { %p1573_p9 = pneg %p1572_p1 }
  0x5c   : > { %p1578_p0 = pnand %p1577_p13, %p1573_p9 }
  0x5e   : > { %1581 = shalt.err (!%p1578_p0)
}
  0x5f   : > { %1313 = dma.hbm_to_vmem [thread:$0]  (!%p1834_p10), %s436_s1, 512, %s438_s11, %s1847_s12, %s1679_s24, %s1680_s27, %s1681_s22  }
  0x60   : > { %449 = sbr.rel (%p1787_p8) target bundleno = 926 (0x39e), region = 64  ;;  %s1920_s30 = sand.u32 (!%p1787_p8), 1, %s1667_s18  }
  0x61   : > { %s1227_s14 = sshll.u32 (!%p1787_p8), %s1920_s30, 5  ;;  %s452_s25 = scalar_lea.sflag (!%p1787_p8), [#allocation3], %s1920_s30 }
  0x62   : > { %s1924_s10 = scalar_lea.vmem (!%p1787_p8), [#allocation2], %s1227_s14 }
  0x65   : > { %1642 = dma.done.wait (%p1774_p4), %s452_s25, 512  }
  0x66   : > { %1644 = vsyncadd (%p1774_p4), %s452_s25, 4294966784  ;;  %s461_s12 = sand.u32 1, %s1765_s21   ;;  %s465_s16 = scalar_lea.vmem [#allocation5], %s1227_s14 }
  0x67   : > { %s462_s28 = scalar_lea.sflag [#allocation6], %s461_s12 }
  0x68   : > { %1646 = dma.done.wait (%p1774_p4), %s462_s28, 1024  }
  0x69   : > { %1648 = vsyncadd (%p1774_p4), %s462_s28, 4294966272  ;;  %s1935_s24 = scalar_lea.vmem [#allocation7], %s1227_s14  ;;  %p2085_p8 = scmp.eq.s32.totalorder %s1765_s21, 0 }
  0x6b   : > { %1650 = dma.done.wait (%p2085_p8), [#allocation9], 256   ;;  %p2086_p10 = pmov %p2085_p8 }
  0x6c   : > { %p2087_p12 = pmov %p2085_p8 }
  0x6d   : > { %1652 = vsyncadd (%p2086_p10), [#allocation9], 4294967040 }
  0x6e   : > { %1654 = dma.done.wait (%p2087_p12), [#allocation12], 640   ;;  %p2088_p5 = pmov %p2085_p8 }
  0x6f   : > { %vm562_vm0 = vcmask 64512   ;;  %v604_v0 = vld [vmem:[#allocation10] sm:$0xff]  ;;  %v549_v1 = vld [vmem:[%s465_s16] sm:$0xff]  ;;  %v551_v6 = vld [vmem:[%s465_s16 + $0x10] sm:$0xff]  ;;  %vm1032_vm1 = vcmask 261120   ;;  %s1234_s11 = sshll.u32 %s1920_s30, 3 }
  0x70   : > { %1656 = vsyncadd (%p2088_p5), [#allocation12], 4294966656  ;;  %v557_v2 = vld [vmem:[#allocation8] sm:$0xff]  ;;  %636 = vmatpush.msra.mxu1 %v604_v0  ;;  %v550_v4 = vld [vmem:[%s465_s16 + $0x8] sm:$0xff]  ;;  %s1264_s29 = sshll.u32 %s1765_s21, 3  ;;  %s2089_s26 = sld [smem:[#allocation31_spill]] }
  0x71   : > { %590 = vmatpush.msra.mxu0 %v557_v2  ;;  %v545_v3 = vld [vmem:[%s1924_s10] sm:$0xff]  ;;  %1239 = vmatmul.msk.f32.vlgmr.msra.gmra.mxu1 %vm562_vm0, %v549_v1  ;;  %v546_v5 = vld [vmem:[%s1924_s10 + $0x8] sm:$0xff]  ;;  %v547_v7 = vld [vmem:[%s1924_s10 + $0x10] sm:$0xff]  ;;  %s2090_s14 = sld [smem:[#allocation30_spill]]  ;;  %s544_s21 = scalar_lea.vmem [#allocation14], %s1234_s11 }
  0x72   : > { %1235 = vmatmul.msk.f32.vlgmr.msra.gmra.mxu0 %vm562_vm0, %v545_v3  ;;  %v552_v8 = vld [vmem:[%s465_s16 + $0x18] sm:$0xff]  ;;  %v1367_v10 = vld [vmem:[%s2046_s6] ss:$0 sm:$0xff]  ;;  %v650_v28 = vld [vmem:[#allocation11] sm:$0xff]  ;;  %s1047_s28 = scalar_lea.sflag [#allocation4], %s1920_s30 }
  0x73   : > { %v548_v9 = vld [vmem:[%s1924_s10 + $0x18] sm:$0xff]  ;;  %v1368_v11 = vld [vmem:[%s2044_s4] ss:$0 sm:$0xff]  ;;  %682 = vmatpush.msra.mxu2 %v650_v28  ;;  %v554_v32 = vld [vmem:[%s1935_s24 + $0x8] sm:$0xff]  ;;  %s1059_s10 = sshll.u32 %s544_s21, 4  ;;  %s1060_s10 = int_to_ptr.vmem [resolvable:$true] %s1059_s10 }
  0x74   : > { %v553_v29 = vld [vmem:[%s1935_s24] sm:$0xff]  ;;  %v555_v35 = vld [vmem:[%s1935_s24 + $0x10] sm:$0xff]  ;;  %v556_v40 = vld [vmem:[%s1935_s24 + $0x18] sm:$0xff] }
  0x75   : > { %1243 = vmatmul.msk.f32.vlgmr.msra.gmra.mxu2 %vm562_vm0, %v553_v29  ;;  %v1369_v44 = vld [vmem:[%s2048_s8] ss:$0 sm:$0xff] }
  0x76   : > { %s1057_s13 = scalar_lea.hbm %s2089_s26, %s1264_s29  ;;  %s1617_s22 = scalar_lea.hbm %s2089_s26, 16 }
  0x77   : > { %s1061_s12 = sshll.u32 %s1057_s13, 4  ;;  %s1062_s12 = int_to_ptr.hbm [resolvable:$true] %s1061_s12 }
  0x78   : > { %s1611_s16 = sshra.s32 %s1062_s12, 4  ;;  %s1612_s16 = int_to_ptr.hbm [resolvable:$true] %s1611_s16 }
  0x79   : > { %1240 = vmatmul.msk.f32.gmra.mxu1 %vm562_vm0, %v550_v4  ;;  %s1613_s24 = scalar_lea.hbm %s1612_s16, 8  ;;  %p1618_p9 = scmp.lt.s32.totalorder %s1612_s16, %s2089_s26 }
  0x7a   : > { %1236 = vmatmul.msk.f32.gmra.mxu0 %vm562_vm0, %v546_v5  ;;  %p1614_p4 = scmp.ne.s32.totalorder %s1612_s16, %s1613_s24  ;;  %p1619_p2 = scmp.lt.s32.totalorder %s1617_s22, %s1613_s24 }
  0x7c   : > { %p1615_p7 = pnand %p1614_p4, %p1818_p3  ;;  %p1620_p11 = por %p1619_p2, %p1618_p9 }
  0x7d   : > { %1244 = vmatmul.msk.f32.gmra.mxu2 %vm562_vm0, %v554_v32 }
  0x7e   : > { %p1616_p1 = pneg %p1615_p7 }
  0x80   : > { %p1621_p13 = pnand %p1620_p11, %p1616_p1 }
  0x81   : > { %1241 = vmatmul.msk.f32.gmra.mxu1 %vm562_vm0, %v551_v6 }
  0x82   : > { %1237 = vmatmul.msk.f32.gmra.mxu0 %vm562_vm0, %v547_v7 }
  0x85   : > { %1245 = vmatmul.msk.f32.gmra.mxu2 %vm562_vm0, %v555_v35  ;;  %v1370_v35 = vld [vmem:[%s2090_s14] ss:$0 sm:$0xff] }
  0x89   : > { %1242 = vmatmul.msk.f32.gmra.mxu1 %vm562_vm0, %v552_v8 }
  0x8a   : > { %1238 = vmatmul.msk.f32.gmra.mxu0 %vm562_vm0, %v548_v9 }
  0x8d   : > { %1246 = vmatmul.msk.f32.gmra.mxu2 %vm562_vm0, %v556_v40 }
  0xee   : > { %v638_v12 = vpop.f32.mrf.mxu1 }
  0xef   : > { %v592_v13 = vpop.f32.mrf.mxu0  ;;  %v639_v14 = vadd.f32 %v1367_v10, %v638_v12 }
  0xf0   : > { %v593_v15 = vadd.f32 %v1368_v11, %v592_v13 }
  0xf1   : > { %1247 = vmatpush.xpose.msk.msra.mxu3 %vm562_vm0, %v639_v14 }
  0xf4   : > { %1248 = vmatmul.msk.f32.vlgmr.msra.gmra.mxu3 %vm562_vm0, %v593_v15 }
  0xf6   : > { %v641_v16 = vpop.f32.mrf.mxu1 }
  0xf7   : > { %v595_v17 = vpop.f32.mrf.mxu0  ;;  %v642_v18 = vadd.f32 %v1367_v10, %v641_v16 }
  0xf8   : > { %v596_v19 = vadd.f32 %v1368_v11, %v595_v17  ;;  %v684_v47 = vpop.f32.mrf.mxu2 }
  0xf9   : > { %1249 = vmatpush.xpose.msk.msrb.mxu3 %vm562_vm0, %v642_v18  ;;  %v685_v50 = vadd.f32 %v1369_v44, %v684_v47  ;;  %v936_v18 = vld [vmem:[#allocation13] sm:$0xff] }
  0xfb   : > { %862 = vmatpush.msrb.mxu0 %v685_v50 }
  0xfc   : > { %1250 = vmatmul.msk.f32.vlgmr.msrb.gmra.mxu3 %vm562_vm0, %v596_v19  ;;  %v937_v19 = vld [vmem:[#allocation13 + $0x8] sm:$0xff] }
  0xfd   : > { %958 = vmatpush.msra.mxu0 %v936_v18 }
  0xfe   : > { %v644_v20 = vpop.f32.mrf.mxu1 }
  0xff   : > { %v598_v21 = vpop.f32.mrf.mxu0  ;;  %v645_v22 = vadd.f32 %v1367_v10, %v644_v20  ;;  %v938_v20 = vld [vmem:[#allocation13 + $0x10] sm:$0xff] }
 0x100   : > { %v599_v23 = vadd.f32 %v1368_v11, %v598_v21  ;;  %v687_v54 = vpop.f32.mrf.mxu2  ;;  %v939_v21 = vld [vmem:[#allocation13 + $0x18] sm:$0xff] }
 0x101   : > { %1251 = vmatpush.xpose.msk.msra.mxu3 %vm562_vm0, %v645_v22  ;;  %v688_v57 = vadd.f32 %v1369_v44, %v687_v54 }
 0x103   : > { %885 = vmatpush.msrb.mxu1 %v688_v57 }
 0x104   : > { %1252 = vmatmul.msk.f32.vlgmr.msra.gmra.mxu3 %vm562_vm0, %v599_v23 }
 0x105   : > { %981 = vmatpush.msra.mxu1 %v937_v19 }
 0x106   : > { %v647_v24 = vpop.f32.mrf.mxu1 }
 0x107   : > { %v601_v25 = vpop.f32.mrf.mxu0  ;;  %v648_v26 = vadd.f32 %v1367_v10, %v647_v24 }
 0x108   : > { %v602_v27 = vadd.f32 %v1368_v11, %v601_v25  ;;  %v690_v2 = vpop.f32.mrf.mxu2 }
 0x109   : > { %1253 = vmatpush.xpose.msk.msrb.mxu3 %vm562_vm0, %v648_v26  ;;  %v691_v3 = vadd.f32 %v1369_v44, %v690_v2 }
 0x10b   : > { %908 = vmatpush.msrb.mxu2 %v691_v3 }
 0x10c   : > { %1254 = vmatmul.msk.f32.vlgmr.msrb.gmra.mxu3 %vm562_vm0, %v602_v27 }
 0x10d   : > { %1004 = vmatpush.msra.mxu2 %v938_v20 }
 0x110   : > { %v693_v4 = vpop.f32.mrf.mxu2 }
 0x111   : > { %v694_v5 = vadd.f32 %v1369_v44, %v693_v4 }
 0x113   : > { %931 = vmatpush.msra.mxu3 %v694_v5 }
 0x115   : > { %1027 = vmatpush.msrb.mxu3 %v939_v21 }
 0x177   : > { %v719_v30 = vpop.f32.mrf.mxu3 }
 0x178   : > { %v800_v31 = vsel %vm562_vm0, %v719_v30, -inf }
 0x179   : > { %801 = vmax.xlane.f32.xlu1 %v800_v31 }
 0x17f   : > { %v745_v33 = vpop.f32.mrf.mxu3 }
 0x180   : > { %v803_v34 = vsel %vm562_vm0, %v745_v33, -inf }
 0x181   : > { %804 = vmax.xlane.f32.xlu1 %v803_v34 }
 0x187   : > { %v771_v36 = vpop.f32.mrf.mxu3 }
 0x188   : > { %v806_v37 = vsel %vm562_vm0, %v771_v36, -inf }
 0x189   : > { %807 = vmax.xlane.f32.xlu0 %v806_v37 }
 0x18f   : > { %v797_v38 = vpop.f32.mrf.mxu3 }
 0x190   : > { %v809_v39 = vsel %vm562_vm0, %v797_v38, -inf }
 0x191   : > { %810 = vmax.xlane.f32.xlu0 %v809_v39 }
 0x1ec   : > { %v802_v41 = vpop.xlane.xlu1 %801 }
 0x1ed   : > { %v812_v42 = vsub.f32 %v719_v30, %v802_v41 }
 0x1ef   : > { %v816_v43 = vmul.f32 1.442695, %v812_v42 }
 0x1f1   : > { %1371 = vpow2.f32 %v816_v43 }
 0x1f4   : > { %v805_v45 = vpop.xlane.xlu1 %804 }
 0x1f5   : > { %v813_v46 = vsub.f32 %v745_v33, %v805_v45 }
 0x1f7   : > { %v1372_v48 = vpop.eup %1371  ;;  %v818_v49 = vmul.f32 1.442695, %v813_v46 }
 0x1f8   : > { %v824_v51 = vsel %vm562_vm0, %v1372_v48, 0.0 }
 0x1f9   : > { %1373 = vpow2.f32 %v818_v49  ;;  %825 = vadd.xlane.f32.xlu0 %v824_v51 }
 0x1fc   : > { %v808_v52 = vpop.xlane.xlu0 %807 }
 0x1fd   : > { %v814_v53 = vsub.f32 %v771_v36, %v808_v52 }
 0x1ff   : > { %v1374_v55 = vpop.eup %1373  ;;  %v820_v56 = vmul.f32 1.442695, %v814_v53 }
 0x200   : > { %v827_v58 = vsel %vm562_vm0, %v1374_v55, 0.0 }
 0x201   : > { %1375 = vpow2.f32 %v820_v56  ;;  %828 = vadd.xlane.f32.xlu1 %v827_v58 }
 0x204   : > { %v811_v59 = vpop.xlane.xlu0 %810 }
 0x205   : > { %v815_v60 = vsub.f32 %v797_v38, %v811_v59 }
 0x207   : > { %v1376_v61 = vpop.eup %1375  ;;  %v822_v62 = vmul.f32 1.442695, %v815_v60 }
 0x208   : > { %v830_v63 = vsel %vm562_vm0, %v1376_v61, 0.0 }
 0x209   : > { %1377 = vpow2.f32 %v822_v62  ;;  %831 = vadd.xlane.f32.xlu2 %v830_v63 }
 0x20f   : > { %v1378_v0 = vpop.eup %1377 }
 0x210   : > { %v833_v1 = vsel %vm562_vm0, %v1378_v0, 0.0 }
 0x211   : > { %834 = vadd.xlane.f32.xlu2 %v833_v1 }
 0x26c   : > { %v826_v6 = vpop.xlane.xlu0 %825 }
 0x26d   : > { %1379 = vrcp.f32 %v826_v6 }
 0x273   : > { %v1380_v7 = vpop.eup %1379 }
 0x274   : > { %v840_v8 = vmul.f32 %v1380_v7, %v1372_v48  ;;  %v829_v9 = vpop.xlane.xlu1 %828 }
 0x275   : > { %1381 = vrcp.f32 %v829_v9 }
 0x276   : > { %1255 = vmatmul.msk.f32.vlgmr.msrb.gmra.mxu0 %vm562_vm0, %v840_v8 }
 0x27b   : > { %v1382_v10 = vpop.eup %1381 }
 0x27c   : > { %v841_v11 = vmul.f32 %v1382_v10, %v1374_v55  ;;  %v832_v12 = vpop.xlane.xlu2 %831 }
 0x27d   : > { %1383 = vrcp.f32 %v832_v12 }
 0x27e   : > { %1256 = vmatmul.msk.f32.vlgmr.msrb.gmra.mxu1 %vm562_vm0, %v841_v11 }
 0x283   : > { %v1384_v13 = vpop.eup %1383 }
 0x284   : > { %v835_v14 = vpop.xlane.xlu2 %834  ;;  %v842_v15 = vmul.f32 %v1384_v13, %v1376_v61 }
 0x285   : > { %1385 = vrcp.f32 %v835_v14 }
 0x286   : > { %1257 = vmatmul.msk.f32.vlgmr.msrb.gmra.mxu2 %vm562_vm0, %v842_v15 }
 0x28b   : > { %v1386_v16 = vpop.eup %1385 }
 0x28c   : > { %v843_v17 = vmul.f32 %v1386_v16, %v1378_v0 }
 0x28e   : > { %1258 = vmatmul.msk.f32.vlgmr.msra.gmra.mxu3 %vm562_vm0, %v843_v17 }
 0x2f3   : > { %v864_v22 = vpop.f32.mrf.mxu0 }
 0x2f4   : > { %1259 = vmatmul.msk.f32.vlgmr.msra.gmra.mxu0 %vm562_vm0, %v864_v22 }
 0x2fb   : > { %v887_v23 = vpop.f32.mrf.mxu1 }
 0x2fc   : > { %1260 = vmatmul.msk.f32.vlgmr.msra.gmra.mxu1 %vm562_vm0, %v887_v23 }
 0x309   : > { %v910_v24 = vpop.f32.mrf.mxu2 }
 0x30a   : > { %1261 = vmatmul.msk.f32.vlgmr.msra.gmra.mxu2 %vm562_vm0, %v910_v24 }
 0x311   : > { %v933_v25 = vpop.f32.mrf.mxu3 }
 0x312   : > { %1262 = vmatmul.msk.f32.vlgmr.msrb.gmra.mxu3 %vm562_vm0, %v933_v25 }
 0x371   : > { %v960_v27 = vpop.f32.mrf.mxu0 }
 0x372   : > { %v1033_v30 = vsel %vm1032_vm1, %v960_v27, 0.0 }
 0x379   : > { %v983_v26 = vpop.f32.mrf.mxu1 }
 0x37a   : > { %v1034_v29 = vsel %vm1032_vm1, %v983_v26, 0.0 }
 0x37b   : > { %v1035_v32 = vadd.f32 %v1034_v29, %v1033_v30 }
 0x38d   : > { %v1006_v28 = vpop.f32.mrf.mxu2 }
 0x38e   : > { %v1036_v31 = vsel %vm1032_vm1, %v1006_v28, 0.0 }
 0x38f   : > { %v1037_v33 = vadd.f32 %v1036_v31, %v1035_v32 }
 0x395   : > { %v1029_v34 = vpop.f32.mrf.mxu3 }
 0x396   : > { %v1038_v36 = vsel %vm1032_vm1, %v1029_v34, 0.0 }
 0x397   : > { %v1039_v37 = vadd.f32 %v1038_v36, %v1037_v33 }
 0x399   : > { %v1044_v38 = vadd.f32 %v1370_v35, %v1039_v37 }
 0x39b   : > { %1045 = vst.msk [vmem:[%s544_s21] sm:$0xff] %vm1032_vm1, %v1044_v38 }
 0x39c   : > { %1624 = shalt.err (!%p1621_p13)
}
 0x39d   : > { %1289 = dma.vmem_to_hbm [thread:$0]  (%p1818_p3), %s1060_s10, 128, %s1062_s12, %s1047_s28  }
 0x39e PF: > { %s2092_s30 = sld [smem:[#allocation20_spill]] }
 0x39f   : > { %s2094_s11 = sld [smem:[#allocation21_spill]] }
 0x3a4   : > { %s1073_s29 = sand.u32 1, %s2092_s30  }
 0x3a5   : > { %p2095_p0 = scmp.ge.s32.totalorder %s2094_s11, 2  ;;  %s1074_s15 = scalar_lea.sflag [#allocation4], %s1073_s29 }
 0x3a7   : > { %p1315_p8 = pnand %p2095_p0, %p1779_p6 }
 0x3a9   : > { %p1316_p10 = pneg %p1315_p8 }
 0x3ab   : > { %1658 = dma.done.wait (%p1316_p10), %s1074_s15, 128  }
 0x3ac   : > { %1660 = vsyncadd (%p1316_p10), %s1074_s15, 4294967168  ;;  %s2096_s20 = sld [smem:[#allocation23_spill]]  ;;  %s2098_s17 = smov %s1667_s18 }
 0x3ad   : > { %s2097_s3 = sld [smem:[#allocation25_spill]]  ;;  %s2099_s18 = smov %s1671_s19 }
 0x3b2   : > { %p29_p12 = scmp.ge.s32.totalorder %s2096_s20, 4  }
 0x3b3   : > { %s2100_s19 = smov %s2097_s3 }
 0x3b4   :  { %31 = sbr.rel (!%p29_p12) target bundleno = 16 (0x10), region = 149 }
 0x3b9   :  { %1080 = vsyncpa [#allocation3], 1 }
 0x3ba   :  { %1082 = vsyncpa [#allocation3 + $0x1], 1 }
 0x3bb   :  { %1083 = vsyncpa [#allocation6], 1 }
 0x3bc   :  { %1085 = vsyncpa [#allocation6 + $0x1], 1 }
 0x3bd   :  { %1086 = vsyncpa [#allocation9], 1 }
 0x3be   :  { %1087 = vsyncpa [#allocation12], 1 }
 0x3bf   :  { %1088 = vsyncpa [#allocation4], 1 }
 0x3c0   :  { %1090 = vsyncpa [#allocation4 + $0x1], 1 }

</bundles_post_ra>
